<compile_context>
chip_gen: v7x
topology: tpu7x:2x2x1
jax: 0.10.0
libtpu: 0.0.40
codegen_flags: <defaults>
</compile_context>

<pallas_src>
import jax
import jax.numpy as jnp
from jax.experimental import pallas as pl
from jax.experimental.pallas import tpu as pltpu


def _feature_attention_kernel(x_ref, q_ref, o_ref):
    # x_ref: (TB, N, D) in x.dtype
    # q_ref: (1, 1, D) float32, already scaled by 1/sqrt(D)
    # o_ref: (TB, D)
    x = x_ref[...]                                    # (TB, N, D)
    q = q_ref[...]                                    # (1, 1, D), f32

    # Scores: VPU multiply + XLU lane reduction over D. f32 via promotion with q.
    s = jnp.sum(x * q, axis=-1, keepdims=True)        # (TB, N, 1), f32

    # Numerically stable softmax over N (sublane reductions, EUP exp); all >= 2-D.
    m = jnp.max(s, axis=1, keepdims=True)             # (TB, 1, 1)
    e = jnp.exp(s - m)                                # (TB, N, 1)
    l = jnp.sum(e, axis=1, keepdims=True)             # (TB, 1, 1)

    # Denominator reciprocal on the EUP (approx) + one Newton step on the tiny
    # (TB,1,1) array to keep full f32 accuracy at negligible cost.
    r = pl.reciprocal(l, approx=True)                 # (TB, 1, 1)
    r = r * (2.0 - l * r)

    # Normalized weights, then weighted sum: VPU multiply + XLU sublane reduce over N.
    w = e * r                                         # (TB, N, 1), f32
    o_ref[...] = jnp.sum(w * x, axis=1).astype(o_ref.dtype)   # (TB, D)


def feature_attention(x, q, *, block_bytes=8 << 20):
    """x: (B, N, D), q: (D,) -> (B, D). Matches PyTorch FeatureAttention.forward."""
    B, N, D = x.shape

    # Fold both 1/s scales into q once: (x/s) @ (q/s) == x @ (q / sqrt(D)). Keep f32.
    q_scaled = (q.astype(jnp.float32) * (1.0 / float(D) ** 0.5)).reshape(1, 1, D)

    # --- batch tile size from the *padded* VMEM footprint -----------------------
    itemsize = x.dtype.itemsize
    sub = {4: 8, 2: 16, 1: 32}.get(itemsize, 8)       # sublane packing per dtype
    d_pad = pl.cdiv(D, 128) * 128
    n_pad = pl.cdiv(N, sub) * sub
    row_bytes = n_pad * d_pad * itemsize              # VMEM bytes of one (N, D) row

    tb = max(1, block_bytes // row_bytes)
    if tb >= B:
        tb = B
        if B >= 16:
            # Whole batch fits in one block: split into 2 so the "parallel" grid
            # axis can still shard across the 2 TensorCores on v7x.
            tb = pl.cdiv(pl.cdiv(B, 2), 8) * 8
    else:
        tb = max(8, (tb // 8) * 8)                    # output block needs tb % 8 == 0
    grid = pl.cdiv(B, tb)
    # Note: when B % tb != 0 the last block's out-of-range rows hold unspecified
    # data; every reduction is row-local and those output rows are never written
    # back, so the results for rows [0, B) are unaffected.

    # --- explicit VMEM budget (double-buffered x + out + q, plus headroom) ------
    x_bytes = 2 * tb * row_bytes
    o_bytes = 2 * (pl.cdiv(tb, sub) * sub) * d_pad * itemsize
    q_bytes = 2 * 8 * d_pad * 4
    vmem_limit = int(min(max(x_bytes + o_bytes + q_bytes + (4 << 20), 16 << 20),
                         48 << 20))

    return pl.pallas_call(
        _feature_attention_kernel,
        out_shape=jax.ShapeDtypeStruct((B, D), x.dtype),
        grid_spec=pltpu.PrefetchScalarGridSpec(
            num_scalar_prefetch=0,
            grid=(grid,),
            in_specs=[
                pl.BlockSpec((tb, N, D), lambda b: (b, 0, 0)),
                pl.BlockSpec((1, 1, D), lambda b: (0, 0, 0)),
            ],
            out_specs=pl.BlockSpec((tb, D), lambda b: (b, 0)),
        ),
        compiler_params=pltpu.CompilerParams(
            dimension_semantics=("parallel",),
            vmem_limit_bytes=vmem_limit,
        ),
    )(x, q_scaled)


def feature_attention_ref(x, q):
    """Pure-JAX reference matching the PyTorch forward exactly."""
    s = float(x.shape[-1]) ** 0.25
    sc = jnp.einsum("bnd,d->bn", x / s, q / s)
    w = jax.nn.softmax(sc, axis=-1)
    return jnp.sum(x * w[..., None], axis=1)


if __name__ == "__main__":
    key = jax.random.PRNGKey(0)
    k_x, k_q, k_x2, k_q2 = jax.random.split(key, 4)

    # Small shapes consistent with the module (dim=32, seq=8, batch=2).
    B, N, D = 2, 8, 32
    x = jax.random.normal(k_x, (B, N, D), dtype=jnp.float32)
    q = jax.random.normal(k_q, (D,), dtype=jnp.float32)  # nn.Parameter(torch.randn(dim))
    out = jax.block_until_ready(feature_attention(x, q))
    ref = feature_attention_ref(x, q)
    assert out.shape == (B, D)
    assert jnp.allclose(out, ref, atol=1e-4, rtol=1e-4), (
        f"max abs err = {jnp.max(jnp.abs(out - ref))}"
    )

    # Second case exercising batch tiling without padding: B=19 -> tb=16, grid=2,
    # megacore-shardable "parallel" axis, ragged tail rows dropped in the last block.
    B2, N2, D2 = 19, 8, 128
    x2 = jax.random.normal(k_x2, (B2, N2, D2), dtype=jnp.float32)
    q2 = jax.random.normal(k_q2, (D2,), dtype=jnp.float32)
    out2 = jax.block_until_ready(feature_attention(x2, q2))
    ref2 = feature_attention_ref(x2, q2)
    assert out2.shape == (B2, D2)
    assert jnp.allclose(out2, ref2, atol=1e-4, rtol=1e-4), (
        f"max abs err = {jnp.max(jnp.abs(out2 - ref2))}"
    )

    print("KERNEL_OK")
</pallas_src>

<mosaic_0001>
module attributes {stable_mosaic.version = 11 : i64} {
  func.func @_feature_attention_kernel(%arg0: i32, %arg1: memref<2x8x32xf32, #tpu.memory_space<vmem>>, %arg2: memref<1x1x32xf32, #tpu.memory_space<vmem>>, %arg3: memref<2x32xf32, #tpu.memory_space<vmem>>) attributes {dimension_semantics = [#tpu.dimension_semantics<parallel>], iteration_bounds = array<i64: 1>, scalar_prefetch = 0 : i64, scratch_operands = 0 : i64, tpu.core_type = #tpu.core_type<tc>, window_params = [{transform_indices = @transform_0, window_bounds = array<i64: 2, 8, 32>}, {pipeline_mode = #tpu.pipeline_mode<synchronous>, transform_indices = @transform_1, window_bounds = array<i64: 1, 1, 32>}, {transform_indices = @transform_2, window_bounds = array<i64: 2, 32>}]} {
    %c0 = arith.constant 0 : index
    %c0_0 = arith.constant 0 : index
    %c0_1 = arith.constant 0 : index
    %0 = vector.load %arg1[%c0, %c0_0, %c0_1] : memref<2x8x32xf32, #tpu.memory_space<vmem>>, vector<2x8x32xf32>
    %c0_2 = arith.constant 0 : index
    %c0_3 = arith.constant 0 : index
    %c0_4 = arith.constant 0 : index
    %1 = vector.load %arg2[%c0_2, %c0_3, %c0_4] : memref<1x1x32xf32, #tpu.memory_space<vmem>>, vector<1x1x32xf32>
    %2 = vector.broadcast %1 : vector<1x1x32xf32> to vector<2x8x32xf32>
    %3 = arith.mulf %0, %2 : vector<2x8x32xf32>
    %cst = arith.constant dense<0.000000e+00> : vector<2x8xf32>
    %4 = vector.multi_reduction <add>, %3, %cst [2] : vector<2x8x32xf32> to vector<2x8xf32>
    %5 = vector.shape_cast %4 : vector<2x8xf32> to vector<2x8x1xf32>
    %cst_5 = arith.constant dense<0xFF800000> : vector<2x1xf32>
    %6 = vector.multi_reduction <maximumf>, %5, %cst_5 [1] : vector<2x8x1xf32> to vector<2x1xf32>
    %7 = vector.shape_cast %6 : vector<2x1xf32> to vector<2x1x1xf32>
    %8 = vector.broadcast %7 : vector<2x1x1xf32> to vector<2x8x1xf32>
    %9 = arith.subf %5, %8 : vector<2x8x1xf32>
    %10 = math.exp %9 : vector<2x8x1xf32>
    %cst_6 = arith.constant dense<0.000000e+00> : vector<2x1xf32>
    %11 = vector.multi_reduction <add>, %10, %cst_6 [1] : vector<2x8x1xf32> to vector<2x1xf32>
    %12 = vector.shape_cast %11 : vector<2x1xf32> to vector<2x1x1xf32>
    %13 = tpu.reciprocal %12 {approx = true} : vector<2x1x1xf32> -> vector<2x1x1xf32>
    %14 = arith.mulf %12, %13 : vector<2x1x1xf32>
    %cst_7 = arith.constant 2.000000e+00 : f32
    %15 = vector.broadcast %cst_7 : f32 to vector<2x1x1xf32>
    %16 = arith.subf %15, %14 : vector<2x1x1xf32>
    %17 = arith.mulf %13, %16 : vector<2x1x1xf32>
    %18 = vector.broadcast %17 : vector<2x1x1xf32> to vector<2x8x1xf32>
    %19 = arith.mulf %10, %18 : vector<2x8x1xf32>
    %20 = vector.broadcast %19 : vector<2x8x1xf32> to vector<2x8x32xf32>
    %21 = arith.mulf %20, %0 : vector<2x8x32xf32>
    %cst_8 = arith.constant dense<0.000000e+00> : vector<2x32xf32>
    %22 = vector.multi_reduction <add>, %21, %cst_8 [1] : vector<2x8x32xf32> to vector<2x32xf32>
    %c0_9 = arith.constant 0 : index
    %c0_10 = arith.constant 0 : index
    %23 = vector.load %arg3[%c0_9, %c0_10] : memref<2x32xf32, #tpu.memory_space<vmem>>, vector<2x32xf32>
    tpu.vector_store %arg3[%c0_9, %c0_10], %22 {strides = array<i32>} : memref<2x32xf32, #tpu.memory_space<vmem>>, vector<2x32xf32>,
    return
  }
  func.func @transform_0(%arg0: i32) -> (i32, i32, i32) {
    %c0_i32 = arith.constant 0 : i32
    %c0_i32_0 = arith.constant 0 : i32
    %c0_i32_1 = arith.constant 0 : i32
    return %arg0, %c0_i32, %c0_i32_0 : i32, i32, i32
  }
  func.func @transform_1(%arg0: i32) -> (i32, i32, i32) {
    %c0_i32 = arith.constant 0 : i32
    %c0_i32_0 = arith.constant 0 : i32
    %c0_i32_1 = arith.constant 0 : i32
    %c0_i32_2 = arith.constant 0 : i32
    return %c0_i32, %c0_i32_0, %c0_i32_1 : i32, i32, i32
  }
  func.func @transform_2(%arg0: i32) -> (i32, i32) {
    %c0_i32 = arith.constant 0 : i32
    %c0_i32_0 = arith.constant 0 : i32
    return %arg0, %c0_i32 : i32, i32
  }
}

</mosaic_0001>

<bundles_post_ra>
// kernel: tpu_custom_call.1
= control target key start
LH: loop header
LB: loop body
LE: loop exit
PB: predicated region body
PF: predicated region fallthrough
CT: control target
= control target key end

     0   :  { %7 = vsyncpa [#allocation3], 0  ;;  %s233_s0 = inlined_call_operand.hbm [shape: f32[2,8,32], index: 0, kind: input, shape index: {}]   ;;  %s234_s1 = inlined_call_operand.vmem [shape: f32[1,1,32], index: 1, kind: input, shape index: {}]   ;;  %s235_s2 = inlined_call_operand.hbm [shape: f32[2,32], index: 2, kind: output, shape index: {}]  }
   0x1   :  { %8 = vsyncpa [#allocation4], 0  ;;  %s183_s9 = smov [#allocation2]   ;;  %s135_s13 = scalar_lea.hbm %s233_s0, 256 }
   0x2   :  { %s14_s10 = sshll.u32 %s183_s9, 4  ;;  %p136_p0 = scmp.ne.s32.totalorder %s233_s0, %s135_s13  ;;  %s15_s10 = int_to_ptr.vmem [resolvable:$true] %s14_s10 }
   0x3   :  { %p139_p1 = scmp.lt.u32.totalorder %s135_s13, %s233_s0 }
   0x5   :  { %p141_p2 = pnand %p139_p1, %p136_p0 }
   0x7   :  { %144 = shalt.err (!%p141_p2)
}
   0x8   :  { %s145_s18 = scalar_lea.vmem %s15_s10, 256  ;;  %p150_p4 = scmp.lt.s32.totalorder %s15_s10, %s15_s10 }
   0x9   :  { %p146_p3 = scmp.ne.s32.totalorder %s15_s10, %s145_s18  ;;  %p151_p5 = scmp.lt.s32.totalorder %s145_s18, %s145_s18 }
   0xb   :  { %p152_p6 = por %p151_p5, %p150_p4 }
   0xd   :  { %p153_p7 = pnand %p152_p6, %p146_p3 }
   0xf   :  { %156 = shalt.err (!%p153_p7)
}
  0x10   :  { %s184_s19 = smov 128   ;;  %s185_s20 = smov 8  }
  0x11   :  { %20 = dma.hbm_to_vmem [thread:$0]  %s233_s0, 256, %s15_s10, [#allocation3], %s184_s19, %s184_s19, %s185_s20  }
  0x12   :  { %179 = dma.done.wait [#allocation3], 256  }
  0x13   :  { %180 = vsyncadd [#allocation3], 4294967040  ;;  %v26_v0 = vld [vmem:[#allocation2] sm:$0xff]  ;;  %vm37_vm0 = vcmask 261120   ;;  %v27_v2 = vld [vmem:[#allocation2 + $0x8] sm:$0xff]  ;;  %s186_s0 = smov [#allocation5]  }
  0x14   :  { %v122_v1 = vld [vmem:[%s234_s1] ss:$0 sm:$0xff]  ;;  %s113_s1 = sshll.u32 %s186_s0, 4  ;;  %vm102_vm1 = vcmask 1041409   ;;  %vm105_vm2 = vcmask 254976   ;;  %s114_s1 = int_to_ptr.vmem [resolvable:$true] %s113_s1 }
  0x15   :  { %v35_v3 = vmul.f32 %v122_v1, %v26_v0  ;;  %v36_v4 = vmul.f32 %v122_v1, %v27_v2  ;;  %s157_s25 = scalar_lea.vmem %s114_s1, 32  ;;  %p162_p9 = scmp.lt.s32.totalorder %s114_s1, %s114_s1 }
  0x16   :  { %p158_p8 = scmp.ne.s32.totalorder %s114_s1, %s157_s25  ;;  %p163_p10 = scmp.lt.s32.totalorder %s157_s25, %s157_s25 }
  0x17   :  { %v38_v5 = vsel %vm37_vm0, %v35_v3, 0.0  ;;  %v41_v6 = vsel %vm37_vm0, %v36_v4, 0.0 }
  0x18   :  { %39 = vadd.xlane.f32.xlu0 %v38_v5  ;;  %p164_p11 = por %p163_p10, %p162_p9 }
  0x1a   :  { %p165_p12 = pnand %p164_p11, %p158_p8 }
  0x1c   :  { %42 = vadd.xlane.f32.xlu0 %v41_v6 }
  0xa5   :  { %v40_v7 = vpop.xlane.xlu0 %39 }
  0xa6   :  { %v44_v8 = vrot.slane %v40_v7, 4 }
  0xa8   :  { %v45_v9 = vmax.f32 %v40_v7, %v44_v8 }
  0xa9   :  { %v43_v10 = vpop.xlane.xlu0 %42 }
  0xaa   :  { %v46_v11 = vrot.slane %v45_v9, 2  ;;  %v50_v12 = vrot.slane %v43_v10, 4 }
  0xac   :  { %v47_v13 = vmax.f32 %v45_v9, %v46_v11  ;;  %v51_v14 = vmax.f32 %v43_v10, %v50_v12 }
  0xae   :  { %v48_v15 = vrot.slane %v47_v13, 1  ;;  %v52_v16 = vrot.slane %v51_v14, 2 }
  0xb0   :  { %v49_v17 = vmax.f32 %v47_v13, %v48_v15  ;;  %v53_v18 = vmax.f32 %v51_v14, %v52_v16 }
  0xb2   :  { %v56_v19 = vsub.f32 %v40_v7, %v49_v17  ;;  %v54_v20 = vrot.slane %v53_v18, 1 }
  0xb4   :  { %v58_v21 = vmul.f32 1.442695, %v56_v19  ;;  %v55_v22 = vmax.f32 %v53_v18, %v54_v20 }
  0xb6   :  { %127 = vpow2.f32 %v58_v21  ;;  %v57_v23 = vsub.f32 %v43_v10, %v55_v22 }
  0xb8   :  { %v60_v24 = vmul.f32 1.442695, %v57_v23 }
  0xba   :  { %129 = vpow2.f32 %v60_v24 }
  0xc0   :  { %v128_v25 = vpop.eup %127 }
  0xc1   :  { %v62_v26 = vrot.slane %v128_v25, 4 }
  0xc3   :  { %v63_v27 = vadd.f32 %v128_v25, %v62_v26 }
  0xc4   :  { %v130_v28 = vpop.eup %129 }
  0xc5   :  { %v68_v29 = vrot.slane %v130_v28, 4  ;;  %v64_v30 = vrot.slane %v63_v27, 2 }
  0xc7   :  { %v69_v31 = vadd.f32 %v130_v28, %v68_v29  ;;  %v65_v32 = vadd.f32 %v64_v30, %v63_v27 }
  0xc9   :  { %v66_v33 = vrot.slane %v65_v32, 1  ;;  %v70_v34 = vrot.slane %v69_v31, 2 }
  0xcb   :  { %v67_v35 = vadd.f32 %v66_v33, %v65_v32  ;;  %v71_v36 = vadd.f32 %v70_v34, %v69_v31 }
  0xcd   :  { %v72_v37 = vrot.slane %v71_v36, 1  ;;  %131 = vrcp.f32 %v67_v35 }
  0xcf   :  { %v73_v38 = vadd.f32 %v72_v37, %v71_v36 }
  0xd1   :  { %133 = vrcp.f32 %v73_v38 }
  0xd7   :  { %v132_v39 = vpop.eup %131 }
  0xd8   :  { %v76_v40 = vmul.f32 %v132_v39, %v67_v35 }
  0xda   :  { %v78_v41 = vsub.f32 2.0, %v76_v40 }
  0xdb   :  { %v134_v42 = vpop.eup %133 }
  0xdc   :  { %v77_v43 = vmul.f32 %v134_v42, %v73_v38  ;;  %v80_v44 = vmul.f32 %v132_v39, %v78_v41 }
  0xde   :  { %v79_v45 = vsub.f32 2.0, %v77_v43  ;;  %v82_v46 = vmul.f32 %v128_v25, %v80_v44 }
  0xe0   :  { %v81_v47 = vmul.f32 %v134_v42, %v79_v45  ;;  %v84_v48 = vmul.f32 %v82_v46, %v26_v0 }
  0xe2   :  { %v83_v49 = vmul.f32 %v130_v28, %v81_v47  ;;  %v86_v50 = vsel %vm37_vm0, %v84_v48, 0.0 }
  0xe3   :  { %v87_v51 = vrot.slane %v86_v50, 4 }
  0xe4   :  { %v85_v52 = vmul.f32 %v83_v49, %v27_v2 }
  0xe5   :  { %v88_v53 = vadd.f32 %v87_v51, %v86_v50 }
  0xe6   :  { %v93_v54 = vsel %vm37_vm0, %v85_v52, 0.0 }
  0xe7   :  { %v89_v55 = vrot.slane %v88_v53, 2  ;;  %v94_v56 = vrot.slane %v93_v54, 4 }
  0xe9   :  { %v90_v57 = vadd.f32 %v89_v55, %v88_v53  ;;  %v95_v58 = vadd.f32 %v94_v56, %v93_v54 }
  0xeb   :  { %v96_v59 = vrot.slane %v95_v58, 2  ;;  %v91_v60 = vrot.slane %v90_v57, 1 }
  0xed   :  { %v97_v61 = vadd.f32 %v96_v59, %v95_v58  ;;  %v92_v63 = vadd.f32 %v91_v60, %v90_v57 }
  0xef   :  { %v98_v62 = vrot.slane %v97_v61, 1 }
  0xf1   :  { %v99_v0 = vadd.f32 %v98_v62, %v97_v61 }
  0xf3   :  { %v103_v1 = vsel %vm102_vm1, %v99_v0, %v92_v63 }
  0xf4   :  { %106 = vst.msk [vmem:[#allocation5] sm:$0x3] %vm105_vm2, %v103_v1 }
  0xf5   :  { %168 = shalt.err (!%p165_p12)
}
  0xf6   :  { %s169_s28 = scalar_lea.hbm %s235_s2, 32 }
  0xf7   :  { %p170_p13 = scmp.ne.s32.totalorder %s235_s2, %s169_s28  ;;  %p173_p0 = scmp.lt.u32.totalorder %s169_s28, %s235_s2 }
  0xf9   :  { %p175_p1 = pnand %p173_p0, %p170_p13 }
  0xfb   :  { %178 = shalt.err (!%p175_p1)
}
  0xfc   :  { %116 = dma.vmem_to_hbm [thread:$0]  %s114_s1, 32, %s235_s2, [#allocation4]  }
  0xfd   :  { %181 = dma.done.wait [#allocation4], 32  }
  0xfe   :  { %182 = vsyncadd [#allocation4], 4294967264 }
  0xff   :  { %120 = vsyncpa [#allocation3], 1 }
 0x100   :  { %121 = vsyncpa [#allocation4], 1 }

</bundles_post_ra>
